<compile_context>
chip_gen: v7x
topology: tpu7x:2x2x1
jax: 0.10.0
libtpu: 0.0.40
codegen_flags: <defaults>
</compile_context>

<pallas_src>
import math
from functools import partial

import jax
import jax.numpy as jnp
from jax import lax
from jax.experimental import pallas as pl
from jax.experimental.pallas import tpu as pltpu

MODULATION_SHIFT = 0.0            # ExponentialModulation default shift (modulate=True)
_VMEM_LIMIT = 48 * 1024 * 1024    # fits v7x's 64 MiB physical VMEM; ample on v5e/v6e


# --------------------------------------------------------------------------- #
# Kernel 1: implicit-filter MLP (shared Sin activation) + exponential modulation
#           Lane-dense: L on the 128-lane axis, feature dims on sublanes.
# --------------------------------------------------------------------------- #
def _filter_kernel(zT_ref, tT_ref, w1_ref, b1_ref, freq_ref,
                   wi_ref, bi_ref, wlast_ref, deltas_ref, kT_ref):
    """zT:(E,TL) tT:(1,TL) w1:(order,E) b1/freq:(order,1)
    wi:(n_inner,order,order) bi:(n_inner,order,1) wlast:(D,order)
    deltas:(D,1)  ->  kT:(D,TL)."""
    freq = freq_ref[...]                                                # (order, 1)
    h = jnp.dot(w1_ref[...], zT_ref[...],
                preferred_element_type=jnp.float32) + b1_ref[...]       # (order, TL)
    h = jnp.sin(freq * h)
    for i in range(wi_ref.shape[0]):                                    # static unroll
        h = jnp.dot(wi_ref[i], h, preferred_element_type=jnp.float32) + bi_ref[i]
        h = jnp.sin(freq * h)
    hk = jnp.dot(wlast_ref[...], h, preferred_element_type=jnp.float32)  # (D, TL)
    decay = jnp.exp(-jnp.abs(deltas_ref[...]) * tT_ref[...])             # (D, TL)
    kT_ref[...] = hk * (decay + MODULATION_SHIFT)


# --------------------------------------------------------------------------- #
# Kernel 2: fftconv() == causal depthwise conv, lag-domain shift-and-MAC (VPU)
# --------------------------------------------------------------------------- #
def _fftconv_kernel(u_ref, k_ref, d_ref, out_ref, *, n_taps):
    """u:(TC,S)  k:(TC,Dk)  d:(TC,1)  ->  out:(TC,S)

    y[c,t] = sum_{j < n_taps, j <= t} k[c,j] * u[c,t-j]  +  d[c] * u[c,t]

    No Toeplitz / one-hot tensor and no MXU: per tap one XLU lane-roll
    (static shift, free slot) + one VPU masked FMA, fully lane-dense over S.
    The causal band structure is inherent (only n_taps taps are touched).
    """
    u = u_ref[...].astype(jnp.float32)
    k = k_ref[...].astype(jnp.float32)
    tc, s = u.shape
    t_idx = lax.broadcasted_iota(jnp.int32, (tc, s), 1)
    acc = (k[:, 0:1] + d_ref[...]) * u              # tap 0 fused with the D*u term
    for j in range(1, n_taps):                      # static unroll (LLO visibility)
        u_sh = pltpu.roll(u, shift=j, axis=1)       # u_sh[c,t] = u[c,(t-j) mod S]
        u_sh = jnp.where(t_idx >= j, u_sh, 0.0)     # zero the circular wrap
        acc = acc + k[:, j:j + 1] * u_sh
    out_ref[...] = acc.astype(out_ref.dtype)
    # TODO(synk): for very large tap counts (Dk >~ 256) switch the static unroll
    # to a lag-tiled grid axis (or fori_loop + dynamic roll) to bound code size.


# --------------------------------------------------------------------------- #
# Tiling helpers
# --------------------------------------------------------------------------- #
def _pick_channel_tile(C, S, elem_bytes=4, tile_budget_bytes=2 << 20):
    """Largest multiple-of-8 divisor of C whose (tc, S) f32 tile fits the budget."""
    if C % 8 != 0:
        return C                                    # fall back to whole-C blocks
    tc = 8
    cand = 8
    while cand <= C:
        if C % cand == 0 and cand * S * elem_bytes <= tile_budget_bytes:
            tc = cand
        cand += 8
    return tc


def _pick_l_tile(L):
    if L % 128 != 0:
        return L                                    # small/ragged L: one lane block
    for cand in (512, 384, 256, 128):
        if L % cand == 0:
            return cand
    return 128


# --------------------------------------------------------------------------- #
# Wrappers (glue)
# --------------------------------------------------------------------------- #
def hyena_filter_k(params, L):
    """HyenaFilter.filter(L) -> (L, d_model) implicit filter."""
    zT = jnp.transpose(params['z'][0, :L])          # (E, L)   L on lane axis
    tT = jnp.transpose(params['t'][0, :L])          # (1, L)
    order, E = params['W1'].shape
    D = params['Wlast'].shape[0]
    n_inner = params['Wi'].shape[0]
    b1 = params['b1'].reshape(order, 1)
    freq = params['freq'].reshape(order, 1)
    bi = params['bi'].reshape(n_inner, order, 1)
    deltas = params['deltas'].reshape(D, 1)

    TL = _pick_l_tile(L)
    grid = (L // TL,)
    flops = 2 * L * (order * E + n_inner * order * order + order * D) + 4 * L * D
    transcendentals = L * order * (n_inner + 1) + L * D
    bytes_accessed = 4 * ((E + 1) * L + order * (E + 2 + n_inner * (order + 1))
                          + D * (order + 1) + D * L)

    kT = pl.pallas_call(
        _filter_kernel,
        out_shape=jax.ShapeDtypeStruct((D, L), jnp.float32),
        grid=grid,
        in_specs=[
            pl.BlockSpec((E, TL), lambda i: (0, i)),
            pl.BlockSpec((1, TL), lambda i: (0, i)),
            pl.BlockSpec((order, E), lambda i: (0, 0)),
            pl.BlockSpec((order, 1), lambda i: (0, 0)),
            pl.BlockSpec((order, 1), lambda i: (0, 0)),
            pl.BlockSpec((n_inner, order, order), lambda i: (0, 0, 0)),
            pl.BlockSpec((n_inner, order, 1), lambda i: (0, 0, 0)),
            pl.BlockSpec((D, order), lambda i: (0, 0)),
            pl.BlockSpec((D, 1), lambda i: (0, 0)),
        ],
        out_specs=pl.BlockSpec((D, TL), lambda i: (0, i)),
        compiler_params=pltpu.CompilerParams(
            dimension_semantics=("parallel",),
            vmem_limit_bytes=_VMEM_LIMIT),
        cost_estimate=pl.CostEstimate(flops=flops,
                                      transcendentals=transcendentals,
                                      bytes_accessed=bytes_accessed),
    )(zT, tT, params['W1'], b1, freq, params['Wi'], bi,
      params['Wlast'], deltas)
    return jnp.transpose(kT)                        # (L, D), as HyenaFilter.filter(L)[0]


def hyena_fftconv(u, k, bias=None):
    """fftconv(u, k, D) with k of shape (L, Dk), lag over the last axis
    (literal PyTorch fftconv semantics for a (1, L, d_model) implicit filter)."""
    B, C, S = u.shape
    L, Dk = k.shape
    assert C == L, "literal fftconv broadcast needs u.shape[1] == L"
    assert Dk <= S + 1, "circular-wrap case (Dk > seqlen + 1) not handled"
    n_taps = min(Dk, S)                             # taps j >= S can never reach t-j >= 0
    if bias is None:
        d = jnp.zeros((C, 1), jnp.float32)
    else:
        d = bias.astype(jnp.float32).reshape(C, 1)

    TC = _pick_channel_tile(C, S)
    grid = (B, C // TC)
    flops = 2 * B * C * S * (n_taps + 1)
    bytes_accessed = 4 * (2 * B * C * S + C * Dk + C)

    return pl.pallas_call(
        partial(_fftconv_kernel, n_taps=n_taps),
        out_shape=jax.ShapeDtypeStruct((B, C, S), u.dtype),
        grid=grid,
        in_specs=[
            pl.BlockSpec((None, TC, S), lambda b, c: (b, c, 0)),
            pl.BlockSpec((TC, Dk), lambda b, c: (c, 0)),
            pl.BlockSpec((TC, 1), lambda b, c: (c, 0)),
        ],
        out_specs=pl.BlockSpec((None, TC, S), lambda b, c: (b, c, 0)),
        compiler_params=pltpu.CompilerParams(
            dimension_semantics=("parallel", "parallel"),
            vmem_limit_bytes=_VMEM_LIMIT),
        cost_estimate=pl.CostEstimate(flops=flops, transcendentals=0,
                                      bytes_accessed=bytes_accessed),
    )(u, k.astype(jnp.float32), d)


def hyena_filter_forward(params, x, L, k=None, bias=None):
    """HyenaFilter.forward(x, L, k=None, bias=None)."""
    if k is None:
        k = hyena_filter_k(params, L)
    return hyena_fftconv(x, k, bias)


# --------------------------------------------------------------------------- #
# Deterministic parameter construction (shapes from HyenaFilter.__init__)
# --------------------------------------------------------------------------- #
def init_hyena_filter(key, d_model, emb_dim, order, seq_len, num_inner_mlps=2,
                      w=1.0, fast_decay_pct=0.3, slow_decay_pct=1.5, target=0.01):
    assert emb_dim % 2 == 1 and emb_dim >= 3
    keys = jax.random.split(key, 2 + num_inner_mlps)

    def lin(kk, fan_in, fan_out, with_bias=True):
        bound = 1.0 / math.sqrt(fan_in)
        wk, bk = jax.random.split(kk)
        W = jax.random.uniform(wk, (fan_out, fan_in), jnp.float32, -bound, bound)
        b = (jax.random.uniform(bk, (fan_out,), jnp.float32, -bound, bound)
             if with_bias else None)
        return W, b

    W1, b1 = lin(keys[0], emb_dim, order)
    Wi, bi = [], []
    for i in range(num_inner_mlps):
        Wk, bk = lin(keys[1 + i], order, order)
        Wi.append(Wk)
        bi.append(bk)
    Wlast, _ = lin(keys[1 + num_inner_mlps], order, d_model, with_bias=False)
    freq = w * jnp.ones((1, order), jnp.float32)             # shared Sin freq

    # ExponentialModulation deltas
    max_decay = math.log(target) / fast_decay_pct
    min_decay = math.log(target) / slow_decay_pct
    deltas = jnp.linspace(min_decay, max_decay, d_model).astype(jnp.float32)

    # PositionalEmbedding buffers
    t = jnp.linspace(0.0, 1.0, seq_len)[None, :, None].astype(jnp.float32)
    bands = (emb_dim - 1) // 2
    t_rescaled = jnp.linspace(0.0, seq_len - 1, seq_len)[None, :, None]
    wfreq = 2 * math.pi * t_rescaled / seq_len
    f = jnp.linspace(1e-4, bands - 1, bands)[None, None]
    z_real = jnp.cos(f * wfreq)          # real(exp(-1j f w))
    z_imag = -jnp.sin(f * wfreq)         # imag(exp(-1j f w))
    z = jnp.concatenate([t, z_real, z_imag], axis=-1).astype(jnp.float32)

    return dict(W1=W1, b1=b1, Wi=jnp.stack(Wi), bi=jnp.stack(bi), Wlast=Wlast,
                freq=freq, deltas=deltas, z=z, t=t,
                bias=jnp.zeros((d_model,), jnp.float32))


# --------------------------------------------------------------------------- #
# Pure-JAX reference (mirrors the PyTorch code, incl. the FFT path)
# --------------------------------------------------------------------------- #
def _filter_ref(params, L):
    z = params['z'][:, :L]
    t = params['t'][:, :L]
    h = jnp.matmul(z, params['W1'].T, precision='highest') + params['b1']
    h = jnp.sin(params['freq'] * h)
    for i in range(params['Wi'].shape[0]):
        h = jnp.matmul(h, params['Wi'][i].T, precision='highest') + params['bi'][i]
        h = jnp.sin(params['freq'] * h)
    h = jnp.matmul(h, params['Wlast'].T, precision='highest')
    decay = jnp.exp(-t * jnp.abs(params['deltas'][None, None, :]))
    return h * (decay + MODULATION_SHIFT)                    # (1, L, d_model)


def _fftconv_ref(u, k, D):
    seqlen = u.shape[-1]
    fft_size = 2 * seqlen
    k_f = jnp.fft.rfft(k, n=fft_size) / fft_size
    u_f = jnp.fft.rfft(u.astype(k.dtype), n=fft_size)
    y = jnp.fft.irfft(u_f * k_f, n=fft_size, norm='forward')[..., :seqlen]
    if D is not None:
        y = y + u * D[..., None]
    return y.astype(u.dtype)


# --------------------------------------------------------------------------- #
if __name__ == "__main__":
    # Small but consistent config: the literal PyTorch fftconv broadcasting
    # (k of shape (1, L, d_model)) needs u.shape[1] == L.  S = 128 keeps the
    # conv axis exactly one full vreg lane span (lane-dense, unmasked stores).
    d_model, emb_dim, order, num_inner = 16, 5, 8, 2
    module_seq_len = 32
    B, C, S = 2, 16, 128
    L = C

    key = jax.random.PRNGKey(0)
    pkey, xkey = jax.random.split(key)
    params = init_hyena_filter(pkey, d_model, emb_dim, order,
                               module_seq_len, num_inner, w=1.0)
    x = jax.random.normal(xkey, (B, C, S), jnp.float32)      # layout (B, C, S)

    # HyenaFilter.forward(x, L)  (k=None -> implicit filter; bias=None)
    y = hyena_filter_forward(params, x, L)
    y = jax.block_until_ready(y)

    # correctness check against the FFT-based reference
    k_ref = _filter_ref(params, L)                           # (1, L, d_model)
    y_ref = _fftconv_ref(x, k_ref, None)
    k_pal = hyena_filter_k(params, L)
    assert jnp.allclose(k_pal, k_ref[0], rtol=1e-3, atol=1e-3), "filter mismatch"
    assert jnp.allclose(y, y_ref, rtol=1e-3, atol=1e-3), "fftconv mismatch"

    print("KERNEL_OK")
</pallas_src>

<mosaic_0001>
module attributes {stable_mosaic.version = 11 : i64} {
  func.func @_filter_kernel(%arg0: i32, %arg1: memref<5x16xf32, #tpu.memory_space<vmem>>, %arg2: memref<1x16xf32, #tpu.memory_space<vmem>>, %arg3: memref<8x5xf32, #tpu.memory_space<vmem>>, %arg4: memref<8x1xf32, #tpu.memory_space<vmem>>, %arg5: memref<8x1xf32, #tpu.memory_space<vmem>>, %arg6: memref<2x8x8xf32, #tpu.memory_space<vmem>>, %arg7: memref<2x8x1xf32, #tpu.memory_space<vmem>>, %arg8: memref<16x8xf32, #tpu.memory_space<vmem>>, %arg9: memref<16x1xf32, #tpu.memory_space<vmem>>, %arg10: memref<16x16xf32, #tpu.memory_space<vmem>>) attributes {dimension_semantics = [#tpu.dimension_semantics<parallel>], iteration_bounds = array<i64: 1>, scalar_prefetch = 0 : i64, scratch_operands = 0 : i64, tpu.core_type = #tpu.core_type<tc>, window_params = [{transform_indices = @transform_0, window_bounds = array<i64: 5, 16>}, {transform_indices = @transform_1, window_bounds = array<i64: 1, 16>}, {pipeline_mode = #tpu.pipeline_mode<synchronous>, transform_indices = @transform_2, window_bounds = array<i64: 8, 5>}, {pipeline_mode = #tpu.pipeline_mode<synchronous>, transform_indices = @transform_3, window_bounds = array<i64: 8, 1>}, {pipeline_mode = #tpu.pipeline_mode<synchronous>, transform_indices = @transform_4, window_bounds = array<i64: 8, 1>}, {pipeline_mode = #tpu.pipeline_mode<synchronous>, transform_indices = @transform_5, window_bounds = array<i64: 2, 8, 8>}, {pipeline_mode = #tpu.pipeline_mode<synchronous>, transform_indices = @transform_6, window_bounds = array<i64: 2, 8, 1>}, {pipeline_mode = #tpu.pipeline_mode<synchronous>, transform_indices = @transform_7, window_bounds = array<i64: 16, 8>}, {pipeline_mode = #tpu.pipeline_mode<synchronous>, transform_indices = @transform_8, window_bounds = array<i64: 16, 1>}, {transform_indices = @transform_9, window_bounds = array<i64: 16, 16>}]} {
    %c0 = arith.constant 0 : index
    %c0_0 = arith.constant 0 : index
    %0 = vector.load %arg5[%c0, %c0_0] : memref<8x1xf32, #tpu.memory_space<vmem>>, vector<8x1xf32>
    %c0_1 = arith.constant 0 : index
    %c0_2 = arith.constant 0 : index
    %1 = vector.load %arg3[%c0_1, %c0_2] : memref<8x5xf32, #tpu.memory_space<vmem>>, vector<8x5xf32>
    %c0_3 = arith.constant 0 : index
    %c0_4 = arith.constant 0 : index
    %2 = vector.load %arg1[%c0_3, %c0_4] : memref<5x16xf32, #tpu.memory_space<vmem>>, vector<5x16xf32>
    %cst = arith.constant dense<0.000000e+00> : vector<8x16xf32>
    %3 = tpu.matmul %1, %2, %cst {dimension_numbers = #tpu.dot_dimension_numbers<[1], [0], [0], [1], [0, 0, 1, 1], [], []>} : vector<8x5xf32>, vector<5x16xf32>, vector<8x16xf32> -> vector<8x16xf32>
    %c0_5 = arith.constant 0 : index
    %c0_6 = arith.constant 0 : index
    %4 = vector.load %arg4[%c0_5, %c0_6] : memref<8x1xf32, #tpu.memory_space<vmem>>, vector<8x1xf32>
    %5 = vector.broadcast %4 : vector<8x1xf32> to vector<8x16xf32>
    %6 = arith.addf %3, %5 : vector<8x16xf32>
    %7 = vector.broadcast %0 : vector<8x1xf32> to vector<8x16xf32>
    %8 = arith.mulf %7, %6 : vector<8x16xf32>
    %9 = math.sin %8 : vector<8x16xf32>
    %c0_7 = arith.constant 0 : index
    %c0_8 = arith.constant 0 : index
    %c0_9 = arith.constant 0 : index
    %10 = vector.load %arg6[%c0_7, %c0_8, %c0_9] : memref<2x8x8xf32, #tpu.memory_space<vmem>>, vector<1x8x8xf32>
    %11 = vector.shape_cast %10 : vector<1x8x8xf32> to vector<8x8xf32>
    %cst_10 = arith.constant dense<0.000000e+00> : vector<8x16xf32>
    %12 = tpu.matmul %11, %9, %cst_10 {dimension_numbers = #tpu.dot_dimension_numbers<[1], [0], [0], [1], [0, 0, 1, 1], [], []>} : vector<8x8xf32>, vector<8x16xf32>, vector<8x16xf32> -> vector<8x16xf32>
    %c0_11 = arith.constant 0 : index
    %c0_12 = arith.constant 0 : index
    %c0_13 = arith.constant 0 : index
    %13 = vector.load %arg7[%c0_11, %c0_12, %c0_13] : memref<2x8x1xf32, #tpu.memory_space<vmem>>, vector<1x8x1xf32>
    %14 = vector.shape_cast %13 : vector<1x8x1xf32> to vector<8x1xf32>
    %15 = vector.broadcast %14 : vector<8x1xf32> to vector<8x16xf32>
    %16 = arith.addf %12, %15 : vector<8x16xf32>
    %17 = vector.broadcast %0 : vector<8x1xf32> to vector<8x16xf32>
    %18 = arith.mulf %17, %16 : vector<8x16xf32>
    %19 = math.sin %18 : vector<8x16xf32>
    %c1 = arith.constant 1 : index
    %c0_14 = arith.constant 0 : index
    %c0_15 = arith.constant 0 : index
    %20 = vector.load %arg6[%c1, %c0_14, %c0_15] : memref<2x8x8xf32, #tpu.memory_space<vmem>>, vector<1x8x8xf32>
    %21 = vector.shape_cast %20 : vector<1x8x8xf32> to vector<8x8xf32>
    %cst_16 = arith.constant dense<0.000000e+00> : vector<8x16xf32>
    %22 = tpu.matmul %21, %19, %cst_16 {dimension_numbers = #tpu.dot_dimension_numbers<[1], [0], [0], [1], [0, 0, 1, 1], [], []>} : vector<8x8xf32>, vector<8x16xf32>, vector<8x16xf32> -> vector<8x16xf32>
    %c1_17 = arith.constant 1 : index
    %c0_18 = arith.constant 0 : index
    %c0_19 = arith.constant 0 : index
    %23 = vector.load %arg7[%c1_17, %c0_18, %c0_19] : memref<2x8x1xf32, #tpu.memory_space<vmem>>, vector<1x8x1xf32>
    %24 = vector.shape_cast %23 : vector<1x8x1xf32> to vector<8x1xf32>
    %25 = vector.broadcast %24 : vector<8x1xf32> to vector<8x16xf32>
    %26 = arith.addf %22, %25 : vector<8x16xf32>
    %27 = vector.broadcast %0 : vector<8x1xf32> to vector<8x16xf32>
    %28 = arith.mulf %27, %26 : vector<8x16xf32>
    %29 = math.sin %28 : vector<8x16xf32>
    %c0_20 = arith.constant 0 : index
    %c0_21 = arith.constant 0 : index
    %30 = vector.load %arg8[%c0_20, %c0_21] : memref<16x8xf32, #tpu.memory_space<vmem>>, vector<16x8xf32>
    %cst_22 = arith.constant dense<0.000000e+00> : vector<16x16xf32>
    %31 = tpu.matmul %30, %29, %cst_22 {dimension_numbers = #tpu.dot_dimension_numbers<[1], [0], [0], [1], [0, 0, 1, 1], [], []>} : vector<16x8xf32>, vector<8x16xf32>, vector<16x16xf32> -> vector<16x16xf32>
    %c0_23 = arith.constant 0 : index
    %c0_24 = arith.constant 0 : index
    %32 = vector.load %arg9[%c0_23, %c0_24] : memref<16x1xf32, #tpu.memory_space<vmem>>, vector<16x1xf32>
    %33 = math.absf %32 : vector<16x1xf32>
    %cst_25 = arith.constant 0.000000e+00 : f32
    %34 = vector.broadcast %cst_25 : f32 to vector<16x1xf32>
    %35 = arith.subf %34, %33 : vector<16x1xf32>
    %c0_26 = arith.constant 0 : index
    %c0_27 = arith.constant 0 : index
    %36 = vector.load %arg2[%c0_26, %c0_27] : memref<1x16xf32, #tpu.memory_space<vmem>>, vector<1x16xf32>
    %37 = vector.broadcast %35 : vector<16x1xf32> to vector<16x16xf32>
    %38 = vector.broadcast %36 : vector<1x16xf32> to vector<16x16xf32>
    %39 = arith.mulf %37, %38 : vector<16x16xf32>
    %40 = math.exp %39 : vector<16x16xf32>
    %cst_28 = arith.constant 0.000000e+00 : f32
    %41 = vector.broadcast %cst_28 : f32 to vector<16x16xf32>
    %42 = arith.addf %40, %41 : vector<16x16xf32>
    %43 = arith.mulf %31, %42 : vector<16x16xf32>
    %c0_29 = arith.constant 0 : index
    %c0_30 = arith.constant 0 : index
    %44 = vector.load %arg10[%c0_29, %c0_30] : memref<16x16xf32, #tpu.memory_space<vmem>>, vector<16x16xf32>
    tpu.vector_store %arg10[%c0_29, %c0_30], %43 {strides = array<i32>} : memref<16x16xf32, #tpu.memory_space<vmem>>, vector<16x16xf32>,
    return
  }
  func.func @transform_0(%arg0: i32) -> (i32, i32) {
    %c0_i32 = arith.constant 0 : i32
    %c0_i32_0 = arith.constant 0 : i32
    return %c0_i32, %arg0 : i32, i32
  }
  func.func @transform_1(%arg0: i32) -> (i32, i32) {
    %c0_i32 = arith.constant 0 : i32
    %c0_i32_0 = arith.constant 0 : i32
    return %c0_i32, %arg0 : i32, i32
  }
  func.func @transform_2(%arg0: i32) -> (i32, i32) {
    %c0_i32 = arith.constant 0 : i32
    %c0_i32_0 = arith.constant 0 : i32
    %c0_i32_1 = arith.constant 0 : i32
    return %c0_i32, %c0_i32_0 : i32, i32
  }
  func.func @transform_3(%arg0: i32) -> (i32, i32) {
    %c0_i32 = arith.constant 0 : i32
    %c0_i32_0 = arith.constant 0 : i32
    %c0_i32_1 = arith.constant 0 : i32
    return %c0_i32, %c0_i32_0 : i32, i32
  }
  func.func @transform_4(%arg0: i32) -> (i32, i32) {
    %c0_i32 = arith.constant 0 : i32
    %c0_i32_0 = arith.constant 0 : i32
    %c0_i32_1 = arith.constant 0 : i32
    return %c0_i32, %c0_i32_0 : i32, i32
  }
  func.func @transform_5(%arg0: i32) -> (i32, i32, i32) {
    %c0_i32 = arith.constant 0 : i32
    %c0_i32_0 = arith.constant 0 : i32
    %c0_i32_1 = arith.constant 0 : i32
    %c0_i32_2 = arith.constant 0 : i32
    return %c0_i32, %c0_i32_0, %c0_i32_1 : i32, i32, i32
  }
  func.func @transform_6(%arg0: i32) -> (i32, i32, i32) {
    %c0_i32 = arith.constant 0 : i32
    %c0_i32_0 = arith.constant 0 : i32
    %c0_i32_1 = arith.constant 0 : i32
    %c0_i32_2 = arith.constant 0 : i32
    return %c0_i32, %c0_i32_0, %c0_i32_1 : i32, i32, i32
  }
  func.func @transform_7(%arg0: i32) -> (i32, i32) {
    %c0_i32 = arith.constant 0 : i32
    %c0_i32_0 = arith.constant 0 : i32
    %c0_i32_1 = arith.constant 0 : i32
    return %c0_i32, %c0_i32_0 : i32, i32
  }
  func.func @transform_8(%arg0: i32) -> (i32, i32) {
    %c0_i32 = arith.constant 0 : i32
    %c0_i32_0 = arith.constant 0 : i32
    %c0_i32_1 = arith.constant 0 : i32
    return %c0_i32, %c0_i32_0 : i32, i32
  }
  func.func @transform_9(%arg0: i32) -> (i32, i32) {
    %c0_i32 = arith.constant 0 : i32
    %c0_i32_0 = arith.constant 0 : i32
    return %c0_i32, %arg0 : i32, i32
  }
}

</mosaic_0001>

<bundles_post_ra>
// kernel: tpu_custom_call.1
= control target key start
LH: loop header
LB: loop body
LE: loop exit
PB: predicated region body
PF: predicated region fallthrough
CT: control target
= control target key end

     0   :  { %vm46_vm0 = vcmask 1044480   ;;  %v854_v2 = vmov 0.0   ;;  %vm855_vm1 = vmmov 0   ;;  %vm42_vm2 = vcmask 39936   ;;  %s1075_s0 = inlined_call_operand.vmem [shape: f32[5,16], index: 0, kind: input, shape index: {}]   ;;  %s1076_s1 = inlined_call_operand.vmem [shape: f32[1,16], index: 1, kind: input, shape index: {}]   ;;  %s1077_s2 = inlined_call_operand.vmem [shape: f32[8,5], index: 2, kind: input, shape index: {}]   ;;  %s1078_s3 = inlined_call_operand.vmem [shape: f32[8,1], index: 3, kind: input, shape index: {}]   ;;  %s1079_s4 = inlined_call_operand.vmem [shape: f32[8,1], index: 4, kind: input, shape index: {}]   ;;  %s1080_s5 = inlined_call_operand.vmem [shape: f32[2,8,8], index: 5, kind: input, shape index: {}]   ;;  %s1081_s6 = inlined_call_operand.vmem [shape: f32[2,8,1], index: 6, kind: input, shape index: {}]   ;;  %s1082_s7 = inlined_call_operand.vmem [shape: f32[16,8], index: 7, kind: input, shape index: {}]   ;;  %s1083_s8 = inlined_call_operand.vmem [shape: f32[16,1], index: 8, kind: input, shape index: {}]   ;;  %s1084_s9 = inlined_call_operand.hbm [shape: f32[16,16], index: 9, kind: output, shape index: {}]  }
   0x1   :  { %v35_v0 = vld [vmem:[%s1075_s0] sm:$0x1f]  ;;  %768 = vmatprep.subr.mxu0 %v854_v2  ;;  %770 = vmatprep.mubr.msk.f32.mxu0 %vm855_vm1, %v854_v2  ;;  %v856_v5 = vmov 0  }
   0x2   :  { %v34_v1 = vld [vmem:[%s1077_s2] sm:$0xff]  ;;  %769 = vmatpush3.msk.msra.mxu0 %vm46_vm0, %v35_v0  ;;  %812 = vset.pattern.permute.xlu0 %v856_v5 }
   0x3   :  { %v36_v3 = vld [vmem:[%s1078_s3] sm:$0xff] }
   0x4   :  { %v686_v4 = vld [vmem:[%s1083_s8] sm:$0xff] }
   0x5   :  { %14 = vsyncpa [#allocation3], 0  ;;  %771 = vmatmul.mubr.msk.f32.vlgmr.msra.gmra.mrb[0].mxu0 %vm42_vm2, %v34_v1  ;;  %39 = vperm.xlu0 %812, %v36_v3   ;;  %v688_v6 = vand.u32 2147483647, %v686_v4  ;;  %v33_v7 = vld [vmem:[%s1079_s4] sm:$0xff]  ;;  %v687_v10 = vld [vmem:[%s1083_s8 + $0x8] sm:$0xff] }
   0x6   :  { %773 = vmatprep.subr.mxu1 %v854_v2  ;;  %775 = vmatprep.mubr.msk.f32.mxu1 %vm855_vm1, %v854_v2  ;;  %v231_v9 = vld [vmem:[%s1081_s6] sm:$0xff]  ;;  %v689_v11 = vand.u32 2147483647, %v687_v10  ;;  %v750_v12 = vld [vmem:[%s1081_s6 + $0x8] sm:$0xff]  ;;  %v857_v30 = vmov 683565275  }
   0x7   :  { %813 = vset.pattern.permute.xlu1 %v856_v5  ;;  %778 = vmatprep.subr.mxu0 %v854_v2  ;;  %v690_v8 = vsub.f32 0.0, %v688_v6  ;;  %v858_v32 = vmov 2475754826   ;;  %v859_v35 = vmov 2131351028   ;;  %vm237_vm0 = vcmask 64512  }
   0x8   :  { %780 = vmatprep.mubr.msk.f32.mxu0 %vm855_vm1, %v854_v2  ;;  %234 = vperm.xlu1 %813, %v231_v9   ;;  %v691_v13 = vsub.f32 0.0, %v689_v11  ;;  %v860_v38 = vmov 2102212464   ;;  %v861_v41 = vmov 920167782   ;;  %s863_s28 = smov [#allocation2]  }
   0x9   :  { %122 = vperm.xlu0 %812, %v33_v7   ;;  %v862_v44 = vmov 1326507024   ;;  %s727_s29 = sshll.u32 %s863_s28, 4  ;;  %s728_s29 = int_to_ptr.vmem [resolvable:$true] %s727_s29 }
   0xa   :  { %p835_p1 = scmp.lt.s32.totalorder %s728_s29, %s728_s29 }
   0xc   :  { %422 = vperm.xlu1 %813, %v750_v12  }
   0xd   :  { %695 = vperm.xlu0 %812, %v690_v8  }
  0x10   :  { %700 = vperm.xlu1 %813, %v691_v13  }
  0x84   :  { %v40_v14 = vpop.permute.xlu0 %39 }
  0x88   :  { %v943_v18 = vpop.permute.xlu0 %122 }
  0xd8   :  { %v116_v15 = vpop.f32.mrb[0].mxu0 }
  0xd9   :  { %v117_v16 = vadd.f32 %v116_v15, %v40_v14  ;;  %v772_v17 = vpop.f32.mrb[1].mxu0 }
  0xdb   :  { %v946_v19 = vmul.f32 %v943_v18, %v117_v16 }
  0xdd   :  { %v129_v20 = vand.u32 2139095040, %v946_v19  ;;  %v126_v24 = vand.u32 2147483647, %v946_v19  ;;  %vm128_vm10 = vcmp.lt.s32.totalorder %v946_v19, 0  ;;  %vm218_vm15 = vweird.f32 %v946_v19 }
  0xdf   :  { %v130_v21 = vshrl.u32 %v129_v20, 23  ;;  %v133_v28 = vand.u32 8388607, %v126_v24  ;;  %vm127_vm11 = vcmp.le.f32.partialorder %v126_v24, 0.7853982 }
  0xe1   :  { %v740_v22 = vadd.s32 4294967169, %v130_v21  ;;  %v134_v46 = vor.u32 8388608, %v133_v28 }
  0xe3   :  { %v136_v23 = vadd.s32 1, %v740_v22  ;;  %v174_v60 = vshll.u32 %v134_v46, 8 }
  0xe5   :  { %vm137_vm3 = vcmp.gt.s32.totalorder %v136_v23, 0 }
  0xe6   :  { %v138_v25 = vsel %vm137_vm3, %v136_v23, 0 }
  0xe7   :  { %v140_v26 = vand.u32 31, %v138_v25  ;;  %v139_v29 = vshrl.u32 %v138_v25, 5 }
  0xe9   :  { %v141_v27 = vsub.s32 32, %v140_v26  ;;  %v143_v31 = vshll.u32 %v857_v30, %v140_v26  ;;  %v146_v33 = vshll.u32 %v858_v32, %v140_v26  ;;  %v149_v37 = vshll.u32 %v859_v35, %v140_v26 }
  0xea   :  { %v152_v40 = vshll.u32 %v860_v38, %v140_v26  ;;  %v155_v43 = vshll.u32 %v861_v41, %v140_v26  ;;  %vm158_vm4 = vcmp.lt.s32.totalorder %v139_v29, 1  ;;  %vm161_vm5 = vcmp.lt.s32.totalorder %v139_v29, 4 }
  0xeb   :  { %v144_v34 = vshrl.u32 %v858_v32, %v141_v27  ;;  %v147_v36 = vshrl.u32 %v859_v35, %v141_v27  ;;  %v150_v39 = vshrl.u32 %v860_v38, %v141_v27  ;;  %v153_v42 = vshrl.u32 %v861_v41, %v141_v27 }
  0xec   :  { %v156_v45 = vshrl.u32 %v862_v44, %v141_v27  ;;  %v142_v55 = vshrl.u32 %v857_v30, %v141_v27  ;;  %vm160_vm6 = vcmp.lt.s32.totalorder %v139_v29, 3  ;;  %vm159_vm7 = vcmp.lt.s32.totalorder %v139_v29, 2 }
  0xed   :  { %v145_v47 = vor.u32 %v144_v34, %v143_v31  ;;  %v148_v48 = vor.u32 %v147_v36, %v146_v33  ;;  %v151_v49 = vor.u32 %v150_v39, %v149_v37  ;;  %v154_v50 = vor.u32 %v153_v42, %v152_v40 }
  0xee   :  { %v157_v51 = vor.u32 %v156_v45, %v155_v43 }
  0xef   :  { %v163_v52 = vsel %vm161_vm5, %v151_v49, 2102212464  ;;  %v166_v53 = vsel %vm158_vm4, %v145_v47, %v148_v48  ;;  %v170_v54 = vsel %vm158_vm4, %v148_v48, %v151_v49  ;;  %v167_v56 = vsel %vm161_vm5, %v154_v50, 920167782 }
  0xf0   :  { %v171_v57 = vsel %vm161_vm5, %v157_v51, 1326507024  ;;  %v168_v58 = vsel %vm160_vm6, %v151_v49, %v167_v56  ;;  %v162_v61 = vsel %vm158_vm4, %v142_v55, %v145_v47  ;;  %v164_v62 = vsel %vm160_vm6, %v148_v48, %v163_v52  ;;  %v235_v56 = vpop.permute.xlu1 %234 }
  0xf1   :  { %v172_v59 = vsel %vm160_vm6, %v154_v50, %v171_v57  ;;  %v169_v63 = vsel %vm159_vm7, %v166_v53, %v168_v58  ;;  %v165_v5 = vsel %vm159_vm7, %v162_v61, %v164_v62 }
  0xf2   :  { %v173_v0 = vsel %vm159_vm7, %v170_v54, %v172_v59  ;;  %v966_v3 = vmul.u32.u64.low %v174_v60, %v169_v63  ;;  %v967_v4 = vmul.u32.u64.high %v174_v60, %v169_v63, %v966_v3  ;;  %v181_v7 = vmul.u32 %v174_v60, %v165_v5  ;;  %v230_v54 = vld [vmem:[%s1080_s5] sm:$0xff] }
  0xf3   :  { %v963_v1 = vmul.u32.u64.low %v174_v60, %v173_v0  ;;  %v964_v2 = vmul.u32.u64.high %v174_v60, %v173_v0, %v963_v1 }
  0xf4   :  { %v184_v6 = vadd.s32 1, %v967_v4 }
  0xf5   :  { %vm183_vm8 = vc.u32 %v964_v2, %v966_v3  ;;  %v182_v21 = vadd.s32 %v966_v3, %v964_v2 }
  0xf6   :  { %v185_v8 = vsel %vm183_vm8, %v184_v6, %v967_v4 }
  0xf7   :  { %v186_v9 = vadd.s32 %v185_v8, %v181_v7 }
  0xf9   :  { %v187_v10 = vadd.s32 536870912, %v186_v9 }
  0xfb   :  { %v188_v11 = vshrl.u32 %v187_v10, 30 }
  0xfd   :  { %v189_v12 = vshll.u32 %v188_v11, 30  ;;  %v212_v37 = vsub.s32 4, %v188_v11 }
  0xff   :  { %v190_v13 = vsub.s32 %v186_v9, %v189_v12  ;;  %v213_v42 = vsel %vm128_vm10, %v212_v37, %v188_v11 }
 0x100   :  { %v215_v45 = vsel %vm127_vm11, 0, %v213_v42 }
 0x101   :  { %v192_v14 = vsub.s32 0, %v190_v13  ;;  %v219_v46 = vadd.s32 3, %v215_v45 }
 0x103   :  { %v741_v15 = vmin.u32 %v192_v14, %v190_v13  ;;  %v220_v47 = vand.u32 3, %v219_v46 }
 0x105   :  { %v194_v16 = vclz %v741_v15  ;;  %vm225_vm12 = vcmp.eq.s32.totalorder %v220_v47, 2  ;;  %vm222_vm13 = vcmp.eq.s32.totalorder %v220_v47, 0  ;;  %vm221_vm14 = vcmp.lt.s32.totalorder %v220_v47, 2 }
 0x107   :  { %v742_v17 = vadd.s32 4294967294, %v194_v16 }
 0x109   :  { %vm743_vm9 = vcmp.lt.s32.totalorder %v742_v17, 0 }
 0x10a   :  { %v197_v20 = vsel %vm743_vm9, 0, %v742_v17 }
 0x10b   :  { %v198_v22 = vsub.s32 32, %v197_v20  ;;  %v202_v23 = vsub.s32 4294967266, %v197_v20  ;;  %v199_v25 = vshll.u32 %v190_v13, %v197_v20 }
 0x10d   :  { %v200_v26 = vshrl.u32 %v182_v21, %v198_v22  ;;  %v203_v27 = vadd.s32 127, %v202_v23 }
 0x10f   :  { %v201_v28 = vor.u32 %v200_v26, %v199_v25  ;;  %v204_v29 = vshll.u32 %v203_v27, 23 }
 0x111   :  { %v205_v31 = vor.u32 4788187, %v204_v29  ;;  %v208_v34 = vcvt.s32.f32 %v201_v28 }
 0x113   :  { %v206_v33 = vand.u32 2147483647, %v205_v31 }
 0x115   :  { %v209_v36 = vmul.f32 %v208_v34, %v206_v33 }
 0x117   :  { %v210_v39 = vxor.u32 2147483648, %v209_v36 }
 0x119   :  { %v211_v40 = vsel %vm128_vm10, %v210_v39, %v209_v36 }
 0x11a   :  { %v214_v43 = vsel %vm127_vm11, %v946_v19, %v211_v40 }
 0x11b   :  { %814 = vcosq.f32 %v214_v43 }
 0x11c   :  { %816 = vsinq.f32 %v214_v43 }
 0x125   :  { %v815_v48 = vpop.eup %814 }
 0x126   :  { %v817_v49 = vpop.eup %816  ;;  %v226_v50 = vxor.u32 2147483648, %v815_v48 }
 0x127   :  { %v223_v51 = vxor.u32 2147483648, %v817_v49 }
 0x128   :  { %v227_v52 = vsel %vm225_vm12, %v226_v50, %v817_v49 }
 0x129   :  { %v224_v53 = vsel %vm222_vm13, %v815_v48, %v223_v51 }
 0x12a   :  { %v228_v24 = vsel %vm221_vm14, %v224_v53, %v227_v52 }
 0x12b   :  { %v229_v55 = vsel %vm218_vm15, nan, %v228_v24 }
 0x12c   :  { %774 = vmatpush3.msra.mxu1 %v229_v55 }
 0x12d   :  { %776 = vmatmul.mubr.msk.f32.vlgmr.msra.gmra.mrb[0].mxu1 %vm237_vm0, %v230_v54 }
 0x200   :  { %v307_v57 = vpop.f32.mrb[0].mxu1 }
 0x201   :  { %v308_v58 = vadd.f32 %v307_v57, %v235_v56  ;;  %v777_v59 = vpop.f32.mrb[1].mxu1 }
 0x203   :  { %v983_v60 = vmul.f32 %v308_v58, %v943_v18 }
 0x205   :  { %v315_v61 = vand.u32 2139095040, %v983_v60  ;;  %v312_v19 = vand.u32 2147483647, %v983_v60  ;;  %vm314_vm8 = vcmp.lt.s32.totalorder %v983_v60, 0  ;;  %vm404_vm13 = vweird.f32 %v983_v60 }
 0x207   :  { %v316_v62 = vshrl.u32 %v315_v61, 23  ;;  %v319_v0 = vand.u32 8388607, %v312_v19  ;;  %vm313_vm9 = vcmp.le.f32.partialorder %v312_v19, 0.7853982 }
 0x209   :  { %v745_v63 = vadd.s32 4294967169, %v316_v62  ;;  %v320_v3 = vor.u32 8388608, %v319_v0 }
 0x20b   :  { %v322_v1 = vadd.s32 1, %v745_v63  ;;  %v360_v9 = vshll.u32 %v320_v3, 8 }
 0x20d   :  { %vm323_vm1 = vcmp.gt.s32.totalorder %v322_v1, 0 }
 0x20e   :  { %v324_v2 = vsel %vm323_vm1, %v322_v1, 0 }
 0x20f   :  { %v326_v4 = vand.u32 31, %v324_v2  ;;  %v325_v5 = vshrl.u32 %v324_v2, 5 }
 0x211   :  { %v327_v6 = vsub.s32 32, %v326_v4  ;;  %v338_v7 = vshll.u32 %v860_v38, %v326_v4  ;;  %v341_v8 = vshll.u32 %v861_v41, %v326_v4  ;;  %v329_v12 = vshll.u32 %v857_v30, %v326_v4 }
 0x212   :  { %v332_v14 = vshll.u32 %v858_v32, %v326_v4  ;;  %v335_v16 = vshll.u32 %v859_v35, %v326_v4  ;;  %vm347_vm2 = vcmp.lt.s32.totalorder %v325_v5, 4  ;;  %vm344_vm3 = vcmp.lt.s32.totalorder %v325_v5, 1 }
 0x213   :  { %v339_v10 = vshrl.u32 %v861_v41, %v327_v6  ;;  %v342_v11 = vshrl.u32 %v862_v44, %v327_v6  ;;  %v330_v13 = vshrl.u32 %v858_v32, %v327_v6  ;;  %v333_v15 = vshrl.u32 %v859_v35, %v327_v6 }
 0x214   :  { %v336_v17 = vshrl.u32 %v860_v38, %v327_v6  ;;  %v328_v23 = vshrl.u32 %v857_v30, %v327_v6  ;;  %vm345_vm4 = vcmp.lt.s32.totalorder %v325_v5, 2  ;;  %vm346_vm5 = vcmp.lt.s32.totalorder %v325_v5, 3 }
 0x215   :  { %v340_v20 = vor.u32 %v339_v10, %v338_v7  ;;  %v343_v21 = vor.u32 %v342_v11, %v341_v8  ;;  %v331_v22 = vor.u32 %v330_v13, %v329_v12  ;;  %v334_v25 = vor.u32 %v333_v15, %v332_v14 }
 0x216   :  { %v337_v26 = vor.u32 %v336_v17, %v335_v16 }
 0x217   :  { %v353_v27 = vsel %vm347_vm2, %v340_v20, 920167782  ;;  %v357_v28 = vsel %vm347_vm2, %v343_v21, 1326507024  ;;  %v352_v31 = vsel %vm344_vm3, %v331_v22, %v334_v25  ;;  %v348_v36 = vsel %vm344_vm3, %v328_v23, %v331_v22 }
 0x218   :  { %v349_v29 = vsel %vm347_vm2, %v337_v26, 2102212464  ;;  %v354_v33 = vsel %vm346_vm5, %v337_v26, %v353_v27  ;;  %v356_v34 = vsel %vm344_vm3, %v334_v25, %v337_v26  ;;  %v358_v40 = vsel %vm346_vm5, %v340_v20, %v357_v28  ;;  %v749_v27 = vld [vmem:[%s1080_s5 + $0x8] sm:$0xff] }
 0x219   :  { %v350_v37 = vsel %vm346_vm5, %v334_v25, %v349_v29  ;;  %v355_v39 = vsel %vm345_vm4, %v352_v31, %v354_v33  ;;  %v359_v42 = vsel %vm345_vm4, %v356_v34, %v358_v40  ;;  %v603_v29 = vld [vmem:[%s1082_s7] sm:$0xff]  ;;  %v423_v31 = vpop.permute.xlu1 %422 }
 0x21a   :  { %v1000_v43 = vmul.u32.u64.low %v360_v9, %v355_v39  ;;  %v1001_v45 = vmul.u32.u64.high %v360_v9, %v355_v39, %v1000_v43  ;;  %v1003_v46 = vmul.u32.u64.low %v360_v9, %v359_v42  ;;  %v1004_v47 = vmul.u32.u64.high %v360_v9, %v359_v42, %v1003_v46  ;;  %785 = vmatprep.mubr.msk.f32.mxu1 %vm237_vm0, %v603_v29 }
 0x21b   :  { %v351_v48 = vsel %vm345_vm4, %v348_v36, %v350_v37 }
 0x21c   :  { %v370_v49 = vadd.s32 1, %v1001_v45  ;;  %v367_v50 = vmul.u32 %v360_v9, %v351_v48  ;;  %vm369_vm6 = vc.u32 %v1004_v47, %v1000_v43  ;;  %v368_v62 = vadd.s32 %v1000_v43, %v1004_v47 }
 0x21e   :  { %v371_v51 = vsel %vm369_vm6, %v370_v49, %v1001_v45 }
 0x21f   :  { %v372_v52 = vadd.s32 %v371_v51, %v367_v50 }
 0x221   :  { %v373_v53 = vadd.s32 536870912, %v372_v52 }
 0x223   :  { %v374_v24 = vshrl.u32 %v373_v53, 30 }
 0x225   :  { %v375_v54 = vshll.u32 %v374_v24, 30  ;;  %v398_v10 = vsub.s32 4, %v374_v24 }
 0x227   :  { %v376_v55 = vsub.s32 %v372_v52, %v375_v54  ;;  %v399_v13 = vsel %vm314_vm8, %v398_v10, %v374_v24 }
 0x228   :  { %v401_v15 = vsel %vm313_vm9, 0, %v399_v13 }
 0x229   :  { %v378_v56 = vsub.s32 0, %v376_v55  ;;  %v405_v16 = vadd.s32 3, %v401_v15 }
 0x22b   :  { %v746_v57 = vmin.u32 %v378_v56, %v376_v55  ;;  %v406_v17 = vand.u32 3, %v405_v16 }
 0x22d   :  { %v380_v58 = vclz %v746_v57  ;;  %vm411_vm10 = vcmp.eq.s32.totalorder %v406_v17, 2  ;;  %vm408_vm11 = vcmp.eq.s32.totalorder %v406_v17, 0  ;;  %vm407_vm12 = vcmp.lt.s32.totalorder %v406_v17, 2 }
 0x22f   :  { %v747_v59 = vadd.s32 4294967294, %v380_v58 }
 0x231   :  { %vm748_vm7 = vcmp.lt.s32.totalorder %v747_v59, 0 }
 0x232   :  { %v383_v61 = vsel %vm748_vm7, 0, %v747_v59 }
 0x233   :  { %v384_v63 = vsub.s32 32, %v383_v61  ;;  %v388_v0 = vsub.s32 4294967266, %v383_v61  ;;  %v385_v1 = vshll.u32 %v376_v55, %v383_v61 }
 0x235   :  { %v386_v2 = vshrl.u32 %v368_v62, %v384_v63  ;;  %v389_v3 = vadd.s32 127, %v388_v0 }
 0x237   :  { %v387_v4 = vor.u32 %v386_v2, %v385_v1  ;;  %v390_v5 = vshll.u32 %v389_v3, 23 }
 0x239   :  { %v391_v6 = vor.u32 4788187, %v390_v5  ;;  %v394_v8 = vcvt.s32.f32 %v387_v4 }
 0x23b   :  { %v392_v7 = vand.u32 2147483647, %v391_v6 }
 0x23d   :  { %v395_v9 = vmul.f32 %v394_v8, %v392_v7 }
 0x23f   :  { %v396_v11 = vxor.u32 2147483648, %v395_v9 }
 0x241   :  { %v397_v12 = vsel %vm314_vm8, %v396_v11, %v395_v9 }
 0x242   :  { %v400_v14 = vsel %vm313_vm9, %v983_v60, %v397_v12 }
 0x243   :  { %818 = vcosq.f32 %v400_v14 }
 0x244   :  { %820 = vsinq.f32 %v400_v14 }
 0x24d   :  { %v819_v20 = vpop.eup %818 }
 0x24e   :  { %v821_v21 = vpop.eup %820  ;;  %v412_v22 = vxor.u32 2147483648, %v819_v20 }
 0x24f   :  { %v409_v23 = vxor.u32 2147483648, %v821_v21 }
 0x250   :  { %v413_v25 = vsel %vm411_vm10, %v412_v22, %v821_v21 }
 0x251   :  { %v410_v26 = vsel %vm408_vm11, %v819_v20, %v409_v23 }
 0x252   :  { %v414_v19 = vsel %vm407_vm12, %v410_v26, %v413_v25  ;;  %vm719_vm12 = vcmask 130048  }
 0x253   :  { %v415_v28 = vsel %vm404_vm13, nan, %v414_v19 }
 0x254   :  { %779 = vmatpush3.msra.mxu0 %v415_v28 }
 0x255   :  { %781 = vmatmul.mubr.msk.f32.vlgmr.msra.gmra.mrb[2].mxu0 %vm237_vm0, %v749_v27 }
 0x328   :  { %v494_v33 = vpop.f32.mrb[2].mxu0 }
 0x329   :  { %v495_v34 = vadd.f32 %v494_v33, %v423_v31  ;;  %v782_v36 = vpop.f32.mrb[3].mxu0 }
 0x32b   :  { %v1024_v60 = vmul.f32 %v495_v34, %v943_v18 }
 0x32d   :  { %v502_v37 = vand.u32 2139095040, %v1024_v60  ;;  %v499_v39 = vand.u32 2147483647, %v1024_v60  ;;  %vm501_vm6 = vcmp.lt.s32.totalorder %v1024_v60, 0  ;;  %vm591_vm11 = vweird.f32 %v1024_v60 }
 0x32f   :  { %v503_v40 = vshrl.u32 %v502_v37, 23  ;;  %v506_v43 = vand.u32 8388607, %v499_v39  ;;  %vm500_vm7 = vcmp.le.f32.partialorder %v499_v39, 0.7853982 }
 0x331   :  { %v752_v42 = vadd.s32 4294967169, %v503_v40  ;;  %v507_v47 = vor.u32 8388608, %v506_v43 }
 0x333   :  { %v509_v45 = vadd.s32 1, %v752_v42  ;;  %v547_v52 = vshll.u32 %v507_v47, 8 }
 0x335   :  { %vm510_vm14 = vcmp.gt.s32.totalorder %v509_v45, 0 }
 0x336   :  { %v511_v46 = vsel %vm510_vm14, %v509_v45, 0 }
 0x337   :  { %v513_v48 = vand.u32 31, %v511_v46  ;;  %v512_v49 = vshrl.u32 %v511_v46, 5 }
 0x339   :  { %v514_v50 = vsub.s32 32, %v513_v48  ;;  %v525_v51 = vshll.u32 %v860_v38, %v513_v48  ;;  %v528_v18 = vshll.u32 %v861_v41, %v513_v48  ;;  %v516_v54 = vshll.u32 %v857_v30, %v513_v48 }
 0x33a   :  { %v519_v56 = vshll.u32 %v858_v32, %v513_v48  ;;  %v522_v58 = vshll.u32 %v859_v35, %v513_v48  ;;  %vm534_vm15 = vcmp.lt.s32.totalorder %v512_v49, 4  ;;  %vm531_vm1 = vcmp.lt.s32.totalorder %v512_v49, 1 }
 0x33b   :  { %v526_v53 = vshrl.u32 %v861_v41, %v514_v50  ;;  %v529_v24 = vshrl.u32 %v862_v44, %v514_v50  ;;  %v517_v55 = vshrl.u32 %v858_v32, %v514_v50  ;;  %v520_v57 = vshrl.u32 %v859_v35, %v514_v50 }
 0x33c   :  { %v523_v59 = vshrl.u32 %v860_v38, %v514_v50  ;;  %v515_v41 = vshrl.u32 %v857_v30, %v514_v50  ;;  %vm532_vm2 = vcmp.lt.s32.totalorder %v512_v49, 2  ;;  %vm533_vm3 = vcmp.lt.s32.totalorder %v512_v49, 3 }
 0x33d   :  { %v527_v61 = vor.u32 %v526_v53, %v525_v51  ;;  %v530_v62 = vor.u32 %v529_v24, %v528_v18  ;;  %v518_v63 = vor.u32 %v517_v55, %v516_v54  ;;  %v521_v0 = vor.u32 %v520_v57, %v519_v56 }
 0x33e   :  { %v524_v44 = vor.u32 %v523_v59, %v522_v58 }
 0x33f   :  { %v540_v1 = vsel %vm534_vm15, %v527_v61, 920167782  ;;  %v544_v2 = vsel %vm534_vm15, %v530_v62, 1326507024  ;;  %v539_v3 = vsel %vm531_vm1, %v518_v63, %v521_v0  ;;  %v535_v35 = vsel %vm531_vm1, %v515_v41, %v518_v63  ;;  %v701_v62 = vpop.permute.xlu1 %700  ;;  %v758_v63 = vld [vmem:[%s1076_s1] ss:$0 sm:$0xff]  ;;  %v696_v41 = vpop.permute.xlu0 %695 }
 0x340   :  { %v536_v32 = vsel %vm534_vm15, %v524_v44, 2102212464  ;;  %v541_v4 = vsel %vm533_vm3, %v524_v44, %v540_v1  ;;  %v543_v5 = vsel %vm531_vm1, %v521_v0, %v524_v44  ;;  %v545_v7 = vsel %vm533_vm3, %v527_v61, %v544_v2  ;;  %v604_v61 = vld [vmem:[%s1082_s7 + $0x8] sm:$0xff]  ;;  %s830_s1 = scalar_lea.vmem %s728_s29, 256 }
 0x341   :  { %v537_v6 = vsel %vm533_vm3, %v521_v0, %v536_v32  ;;  %v542_v38 = vsel %vm532_vm2, %v539_v3, %v541_v4  ;;  %v546_v8 = vsel %vm532_vm2, %v543_v5, %v545_v7  ;;  %v710_v0 = vmul.f32 %v758_v63, %v701_v62  ;;  %p831_p0 = scmp.ne.s32.totalorder %s728_s29, %s830_s1  ;;  %p836_p2 = scmp.lt.s32.totalorder %s830_s1, %s830_s1 }
 0x342   :  { %v1041_v9 = vmul.u32.u64.low %v547_v52, %v542_v38  ;;  %v1042_v10 = vmul.u32.u64.high %v547_v52, %v542_v38, %v1041_v9  ;;  %v1044_v30 = vmul.u32.u64.low %v547_v52, %v546_v8  ;;  %v1045_v11 = vmul.u32.u64.high %v547_v52, %v546_v8, %v1044_v30 }
 0x343   :  { %v538_v12 = vsel %vm532_vm2, %v535_v35, %v537_v6  ;;  %v709_v44 = vmul.f32 %v758_v63, %v696_v41  ;;  %v713_v1 = vmul.f32 1.442695, %v710_v0  ;;  %p837_p3 = por %p836_p2, %p835_p1 }
 0x344   :  { %v557_v13 = vadd.s32 1, %v1042_v10  ;;  %v554_v14 = vmul.u32 %v547_v52, %v538_v12  ;;  %vm556_vm4 = vc.u32 %v1045_v11, %v1041_v9  ;;  %v555_v28 = vadd.s32 %v1041_v9, %v1045_v11 }
 0x345   :  { %p838_p4 = pnand %p837_p3, %p831_p0 }
 0x346   :  { %v558_v15 = vsel %vm556_vm4, %v557_v13, %v1042_v10 }
 0x347   :  { %v559_v16 = vadd.s32 %v558_v15, %v554_v14 }
 0x349   :  { %v560_v17 = vadd.s32 536870912, %v559_v16 }
 0x34b   :  { %v561_v20 = vshrl.u32 %v560_v17, 30 }
 0x34d   :  { %v562_v21 = vshll.u32 %v561_v20, 30  ;;  %v585_v47 = vsub.s32 4, %v561_v20 }
 0x34f   :  { %v563_v22 = vsub.s32 %v559_v16, %v562_v21  ;;  %v586_v50 = vsel %vm501_vm6, %v585_v47, %v561_v20 }
 0x350   :  { %v588_v18 = vsel %vm500_vm7, 0, %v586_v50 }
 0x351   :  { %v565_v23 = vsub.s32 0, %v563_v22  ;;  %v592_v52 = vadd.s32 3, %v588_v18 }
 0x353   :  { %v753_v25 = vmin.u32 %v565_v23, %v563_v22  ;;  %v593_v53 = vand.u32 3, %v592_v52 }
 0x355   :  { %v567_v26 = vclz %v753_v25  ;;  %vm598_vm8 = vcmp.eq.s32.totalorder %v593_v53, 2  ;;  %vm595_vm9 = vcmp.eq.s32.totalorder %v593_v53, 0  ;;  %vm594_vm10 = vcmp.lt.s32.totalorder %v593_v53, 2 }
 0x357   :  { %v754_v19 = vadd.s32 4294967294, %v567_v26 }
 0x359   :  { %vm755_vm5 = vcmp.lt.s32.totalorder %v754_v19, 0 }
 0x35a   :  { %v570_v27 = vsel %vm755_vm5, 0, %v754_v19 }
 0x35b   :  { %v571_v29 = vsub.s32 32, %v570_v27  ;;  %v575_v31 = vsub.s32 4294967266, %v570_v27  ;;  %v572_v33 = vshll.u32 %v563_v22, %v570_v27 }
 0x35d   :  { %v573_v34 = vshrl.u32 %v555_v28, %v571_v29  ;;  %v576_v36 = vadd.s32 127, %v575_v31 }
 0x35f   :  { %v574_v37 = vor.u32 %v573_v34, %v572_v33  ;;  %v577_v40 = vshll.u32 %v576_v36, 23 }
 0x361   :  { %v578_v42 = vor.u32 4788187, %v577_v40  ;;  %v581_v45 = vcvt.s32.f32 %v574_v37 }
 0x363   :  { %v579_v43 = vand.u32 2147483647, %v578_v42 }
 0x365   :  { %v582_v46 = vmul.f32 %v581_v45, %v579_v43 }
 0x367   :  { %v583_v48 = vxor.u32 2147483648, %v582_v46 }
 0x369   :  { %v584_v49 = vsel %vm501_vm6, %v583_v48, %v582_v46 }
 0x36a   :  { %v587_v51 = vsel %vm500_vm7, %v1024_v60, %v584_v49  ;;  %v711_v60 = vmul.f32 1.442695, %v709_v44 }
 0x36b   :  { %822 = vcosq.f32 %v587_v51 }
 0x36c   :  { %824 = vsinq.f32 %v587_v51 }
 0x36d   :  { %826 = vpow2.f32 %v713_v1 }
 0x36e   :  { %828 = vpow2.f32 %v711_v60 }
 0x375   :  { %v823_v24 = vpop.eup %822 }
 0x376   :  { %v825_v54 = vpop.eup %824  ;;  %v599_v55 = vxor.u32 2147483648, %v823_v24 }
 0x377   :  { %v596_v56 = vxor.u32 2147483648, %v825_v54  ;;  %v827_v2 = vpop.eup %826 }
 0x378   :  { %v600_v57 = vsel %vm598_vm8, %v599_v55, %v825_v54  ;;  %v829_v3 = vpop.eup %828 }
 0x379   :  { %v597_v58 = vsel %vm595_vm9, %v823_v24, %v596_v56 }
 0x37a   :  { %v601_v39 = vsel %vm594_vm10, %v597_v58, %v600_v57 }
 0x37b   :  { %v602_v59 = vsel %vm591_vm11, nan, %v601_v39 }
 0x37c   :  { %783 = vmatprep.subr.mxu1 %v602_v59 }
 0x37d   :  { %784 = vmatpush3.msra.mxu1 %v602_v59 }
 0x37e   :  { %786 = vmatmul.mubr.msk.f32.vlgmr.msra.gmra.mrb[2].mxu1 %vm237_vm0, %v604_v61 }
 0x451   :  { %v787_v32 = vpop.f32.mrb[2].mxu1 }
 0x452   :  { %v718_v4 = vmul.f32 %v827_v2, %v787_v32  ;;  %v677_v5 = vpop.f32.mrb[3].mxu1 }
 0x453   :  { %v717_v35 = vmul.f32 %v829_v3, %v677_v5 }
 0x454   :  { %721 = vst.msk [vmem:[#allocation2 + $0x8] sm:$0xff] %vm719_vm12, %v718_v4 }
 0x455   :  { %720 = vst.msk [vmem:[#allocation2] sm:$0xff] %vm719_vm12, %v717_v35 }
 0x456   :  { %841 = shalt.err (!%p838_p4)
}
 0x457   :  { %s842_s10 = scalar_lea.hbm %s1084_s9, 256 }
 0x458   :  { %p843_p5 = scmp.ne.s32.totalorder %s1084_s9, %s842_s10  ;;  %p846_p6 = scmp.lt.u32.totalorder %s842_s10, %s1084_s9 }
 0x45a   :  { %p848_p7 = pnand %p846_p6, %p843_p5 }
 0x45c   :  { %851 = shalt.err (!%p848_p7)
}
 0x45d   :  { %s864_s15 = smov 128   ;;  %s865_s16 = smov 8  }
 0x45e   :  { %733 = dma.vmem_to_hbm [thread:$0]  %s728_s29, 256, %s1084_s9, [#allocation3], %s864_s15, %s864_s15, %s865_s16  }
 0x45f   :  { %852 = dma.done.wait [#allocation3], 256  }
 0x460   :  { %853 = vsyncadd [#allocation3], 4294967040 }
 0x461   :  { %737 = vsyncpa [#allocation3], 1 }

</bundles_post_ra>
